<compile_context>
chip_gen: v5e
topology: v5e:2x2
jax: 0.10.0
libtpu: 0.0.40
codegen_flags: <defaults>
</compile_context>

<pallas_src>
import functools

import jax
import jax.numpy as jnp
from jax.experimental import pallas as pl
from jax.experimental.pallas import tpu as pltpu


def attn_kernel(hb_ref, enc_ref, we_ref, v_ref, out_ref, *, compute_dtype):
    """One (batch tile, seq chunk) grid step.

    hb_ref  (TB, H)  f32           hidden projection + bias (S-independent)
    enc_ref (TS, TB, H) compute_dt encoder chunk (seq-major, pre-cast)
    we_ref  (H, H)   compute_dt    encoder half of attn weight (pre-transposed)
    v_ref   (1, H)   f32           score weight row
    out_ref (S, TB)  f32           raw scores -> softmax weights
                                   (VMEM-resident across all seq chunks)
    """
    s = pl.program_id(1)
    ns = pl.num_programs(1)
    ts, tb, H = enc_ref.shape

    # ---- encoder projection: one tall MXU matmul for this chunk -------------
    enc2d = enc_ref[...].reshape(ts * tb, H)          # tb % 8 == 0 -> aligned flatten
    ep = jnp.dot(enc2d, we_ref[...], preferred_element_type=jnp.float32)
    ep = ep.reshape(ts, tb, H)

    # ---- energy (EUP tanh in compute_dtype) + score (VPU mul, f32 reduce) ---
    pre = ep + hb_ref[...][None, :, :]                # f32
    energy = jnp.tanh(pre.astype(compute_dtype))      # bf16 tanh on v6e/v7x EUP
    scores = jnp.sum(energy.astype(jnp.float32) * v_ref[...][None, :, :],
                     axis=-1)                         # (ts, tb) f32

    start = pl.multiple_of(s * ts, ts)
    out_ref[pl.ds(start, ts), :] = scores

    # ---- finalize: softmax over the sequence axis on the resident block -----
    @pl.when(s == ns - 1)
    def _():
        sc = out_ref[...]                             # (S, tb), all rows written
        m = jnp.max(sc, axis=0, keepdims=True)        # (1, tb)
        p = jnp.exp(sc - m)
        denom = jnp.sum(p, axis=0, keepdims=True)
        out_ref[...] = p * pl.reciprocal(denom, approx=True)


def _pick_seq_tile(S, tb, H, itemsize, target_bytes=2 << 20):
    """Largest divisor of S whose (ts, tb, H) chunk stays under target_bytes."""
    divisors = [d for d in range(1, S + 1) if S % d == 0]
    fitting = [d for d in divisors if d * tb * H * itemsize <= target_bytes]
    if not fitting:
        fitting = [1]
    mult8 = [d for d in fitting if d % 8 == 0]        # prefer sublane-aligned chunks
    return max(mult8) if mult8 else max(fitting)


def attn_forward(hidden, encoder_outputs, w_attn, b_attn, w_score, *,
                 compute_dtype=jnp.bfloat16, batch_tile=None, seq_tile=None):
    """Pallas-backed forward pass matching PyTorch Attn.forward.

    hidden:          (1, B, H) float32
    encoder_outputs: (S, B, H) float32
    w_attn:          (H, 2H)   nn.Linear(hidden*2, hidden).weight
    b_attn:          (H,)      nn.Linear(hidden*2, hidden).bias
    w_score:         (1, H)    nn.Linear(hidden, 1, bias=False).weight
    returns:         (B, 1, S) attention weights
    """
    S, B, H = encoder_outputs.shape
    assert hidden.shape == (1, B, H), hidden.shape
    f32 = jnp.float32

    h = hidden[0].astype(f32)                                   # (B, H)

    # S-independent hidden projection + bias, hoisted to XLA (tiny, f32).
    wh = jnp.transpose(w_attn[:, :H]).astype(f32)               # (H, H)
    hb = jnp.dot(h, wh) + b_attn.astype(f32)                    # (B, H) f32

    # Cast the big / resident operands ONCE in the wrapper.
    we = jnp.transpose(w_attn[:, H:]).astype(compute_dtype)     # (H, H)
    enc = encoder_outputs.astype(compute_dtype)                 # (S, B, H)
    v = w_score.reshape(1, H).astype(f32)                       # (1, H)

    # Pad batch to a multiple of 8 (sublane) so the flattened matmul path is
    # always taken. Padded columns produce finite (tanh-bounded) garbage and
    # are sliced away at the end.
    Bp = ((B + 7) // 8) * 8
    if Bp != B:
        enc = jnp.pad(enc, ((0, 0), (0, Bp - B), (0, 0)))
        hb = jnp.pad(hb, ((0, Bp - B), (0, 0)))

    if batch_tile is None:
        batch_tile = Bp if Bp <= 128 else 128
    tb = min(batch_tile, Bp)
    # Output lane width == batch tile: full batch or a 128-multiple (lane-dense).
    assert tb == Bp or tb % 128 == 0, tb
    nb = pl.cdiv(Bp, tb)

    cbytes = jnp.dtype(compute_dtype).itemsize
    if seq_tile is None:
        seq_tile = _pick_seq_tile(S, tb, H, cbytes)
    ts = seq_tile
    assert S % ts == 0, (S, ts)
    ns = S // ts

    # Explicit VMEM budget: double-buffered encoder chunk + resident weights +
    # resident (S, tb) scores + in-flight f32 intermediates, with 2x slack.
    # Clamped to [32 MiB, 48 MiB] so it is safe on v5e/v6e (128 MiB) and
    # v7x (64 MiB physical).
    est = (2 * ts * tb * H * cbytes          # encoder double buffer
           + 2 * H * H * cbytes              # we
           + 2 * tb * H * 4                  # hb
           + 2 * S * tb * 4                  # resident scores / output
           + ts * tb * H * (8 + cbytes))     # ep(f32) + pre(f32) + energy
    vmem_limit = int(min(48 * 1024 * 1024, max(32 * 1024 * 1024, 2 * est)))

    kernel = functools.partial(attn_kernel, compute_dtype=compute_dtype)
    out_sb = pl.pallas_call(
        kernel,
        out_shape=jax.ShapeDtypeStruct((S, Bp), jnp.float32),
        grid=(nb, ns),
        in_specs=[
            pl.BlockSpec((tb, H), lambda i, s: (i, 0)),         # hb (S-independent)
            pl.BlockSpec((ts, tb, H), lambda i, s: (s, i, 0)),  # encoder chunk
            pl.BlockSpec((H, H), lambda i, s: (0, 0)),          # we, VMEM-resident
            pl.BlockSpec((1, H), lambda i, s: (0, 0)),          # score row
        ],
        out_specs=pl.BlockSpec((S, tb), lambda i, s: (0, i)),   # resident over s
        compiler_params=pltpu.CompilerParams(
            dimension_semantics=("parallel", "arbitrary"),
            vmem_limit_bytes=vmem_limit,
        ),
    )(hb, enc, we, v)

    # Only the small (S, B) score matrix is sliced / transposed here.
    # TODO(synk): seq_mask / dropout branches of the PyTorch forward are not
    # implemented (forward defaults are None).
    return jnp.transpose(out_sb[:, :B])[:, None, :]             # (B, 1, S)


def _reference(hidden, encoder_outputs, w_attn, b_attn, w_score):
    """Pure-JAX reference mirroring the PyTorch code, for a sanity check."""
    S, B, H = encoder_outputs.shape
    hid = jnp.tile(hidden, (S, 1, 1))                           # (S, B, H)
    energy_in = jnp.concatenate([hid, encoder_outputs], axis=2).reshape(-1, 2 * H)
    e = jnp.tanh(energy_in @ w_attn.T + b_attn)                 # (S*B, H)
    sc = (e @ w_score.T)[:, 0].reshape(S, B).T                  # (B, S)
    return jax.nn.softmax(sc, axis=1)[:, None, :]               # (B, 1, S)


if __name__ == "__main__":
    def _run_case(S, B, H, compute_dtype, batch_tile, seq_tile, atol, rtol):
        key = jax.random.PRNGKey(0)
        k1, k2, k3, k4, k5 = jax.random.split(key, 5)
        hidden = jax.random.normal(k1, (1, B, H), dtype=jnp.float32)
        encoder_outputs = jax.random.normal(k2, (S, B, H), dtype=jnp.float32)
        w_attn = jax.random.normal(k3, (H, 2 * H), dtype=jnp.float32) * 0.1
        b_attn = jax.random.normal(k4, (H,), dtype=jnp.float32) * 0.1
        w_score = jax.random.normal(k5, (1, H), dtype=jnp.float32) * 0.1

        out = attn_forward(hidden, encoder_outputs, w_attn, b_attn, w_score,
                           compute_dtype=compute_dtype, batch_tile=batch_tile,
                           seq_tile=seq_tile)
        out = jax.block_until_ready(out)
        ref = _reference(hidden, encoder_outputs, w_attn, b_attn, w_score)
        assert out.shape == (B, 1, S), (out.shape, (B, 1, S))
        assert jnp.allclose(out, ref, atol=atol, rtol=rtol), \
            f"mismatch vs reference (S={S}, B={B}, H={H}, dtype={compute_dtype})"
        assert jnp.allclose(jnp.sum(out, axis=-1), 1.0, atol=1e-2)

    # Small "spec" shapes: seq=8, batch=8, hidden=32 (single grid step), f32.
    _run_case(S=8, B=8, H=32, compute_dtype=jnp.float32, batch_tile=None,
              seq_tile=None, atol=5e-3, rtol=5e-3)
    # Same shapes, bf16 MXU operands / bf16 tanh (f32 accumulation & softmax).
    _run_case(S=8, B=8, H=32, compute_dtype=jnp.bfloat16, batch_tile=None,
              seq_tile=None, atol=2e-2, rtol=2e-2)
    # Batch not a multiple of 8 -> exercises wrapper-side padding path.
    _run_case(S=8, B=6, H=32, compute_dtype=jnp.float32, batch_tile=None,
              seq_tile=None, atol=5e-3, rtol=5e-3)
    # Multi batch tile AND multi seq chunk (pl.when finalize path), bf16.
    _run_case(S=16, B=256, H=64, compute_dtype=jnp.bfloat16, batch_tile=128,
              seq_tile=8, atol=2e-2, rtol=2e-2)

    print("KERNEL_OK")
</pallas_src>

<mosaic_0001>
module attributes {stable_mosaic.version = 11 : i64} {
  func.func @attn_kernel(%arg0: i32, %arg1: i32, %arg2: memref<8x32xf32, #tpu.memory_space<vmem>>, %arg3: memref<8x8x32xf32, #tpu.memory_space<vmem>>, %arg4: memref<32x32xf32, #tpu.memory_space<vmem>>, %arg5: memref<1x32xf32, #tpu.memory_space<vmem>>, %arg6: memref<8x8xf32, #tpu.memory_space<vmem>>) attributes {dimension_semantics = [#tpu.dimension_semantics<parallel>, #tpu.dimension_semantics<arbitrary>], iteration_bounds = array<i64: 1, 1>, scalar_prefetch = 0 : i64, scratch_operands = 0 : i64, tpu.core_type = #tpu.core_type<tc>, window_params = [{transform_indices = @transform_0, window_bounds = array<i64: 8, 32>}, {transform_indices = @transform_1, window_bounds = array<i64: 8, 8, 32>}, {pipeline_mode = #tpu.pipeline_mode<synchronous>, transform_indices = @transform_2, window_bounds = array<i64: 32, 32>}, {pipeline_mode = #tpu.pipeline_mode<synchronous>, transform_indices = @transform_3, window_bounds = array<i64: 1, 32>}, {transform_indices = @transform_4, window_bounds = array<i64: 8, 8>}]} {
    %c0 = arith.constant 0 : index
    %c0_0 = arith.constant 0 : index
    %c0_1 = arith.constant 0 : index
    %0 = vector.load %arg3[%c0, %c0_0, %c0_1] : memref<8x8x32xf32, #tpu.memory_space<vmem>>, vector<8x8x32xf32>
    %1 = vector.shape_cast %0 : vector<8x8x32xf32> to vector<64x32xf32>
    %c0_2 = arith.constant 0 : index
    %c0_3 = arith.constant 0 : index
    %2 = vector.load %arg4[%c0_2, %c0_3] : memref<32x32xf32, #tpu.memory_space<vmem>>, vector<32x32xf32>
    %cst = arith.constant dense<0.000000e+00> : vector<64x32xf32>
    %3 = tpu.matmul %1, %2, %cst {dimension_numbers = #tpu.dot_dimension_numbers<[1], [0], [0], [1], [0, 0, 1, 1], [], []>} : vector<64x32xf32>, vector<32x32xf32>, vector<64x32xf32> -> vector<64x32xf32>
    %4 = vector.shape_cast %3 : vector<64x32xf32> to vector<8x8x32xf32>
    %c0_4 = arith.constant 0 : index
    %c0_5 = arith.constant 0 : index
    %5 = vector.load %arg2[%c0_4, %c0_5] : memref<8x32xf32, #tpu.memory_space<vmem>>, vector<8x32xf32>
    %6 = vector.shape_cast %5 : vector<8x32xf32> to vector<1x8x32xf32>
    %7 = vector.broadcast %6 : vector<1x8x32xf32> to vector<8x8x32xf32>
    %8 = arith.addf %4, %7 : vector<8x8x32xf32>
    %9 = math.tanh %8 : vector<8x8x32xf32>
    %c0_6 = arith.constant 0 : index
    %c0_7 = arith.constant 0 : index
    %10 = vector.load %arg5[%c0_6, %c0_7] : memref<1x32xf32, #tpu.memory_space<vmem>>, vector<1x32xf32>
    %11 = vector.shape_cast %10 : vector<1x32xf32> to vector<1x1x32xf32>
    %12 = vector.broadcast %11 : vector<1x1x32xf32> to vector<8x8x32xf32>
    %13 = arith.mulf %9, %12 : vector<8x8x32xf32>
    %cst_8 = arith.constant dense<0.000000e+00> : vector<8x8xf32>
    %14 = vector.multi_reduction <add>, %13, %cst_8 [2] : vector<8x8x32xf32> to vector<8x8xf32>
    %c8_i32 = arith.constant 8 : i32
    %15 = arith.muli %arg1, %c8_i32 : i32
    %16 = tpu.assume_multiple %15, 8 : i32
    %17 = arith.index_cast %16 : i32 to index
    %c0_9 = arith.constant 0 : index
    %18 = vector.load %arg6[%17, %c0_9] : memref<8x8xf32, #tpu.memory_space<vmem>>, vector<8x8xf32>
    tpu.vector_store %arg6[%17, %c0_9], %14 {strides = array<i32>} : memref<8x8xf32, #tpu.memory_space<vmem>>, vector<8x8xf32>,
    %c0_i32 = arith.constant 0 : i32
    %19 = arith.cmpi eq, %arg1, %c0_i32 : i32
    %20 = arith.extui %19 : i1 to i32
    %c0_i32_10 = arith.constant 0 : i32
    %21 = arith.cmpi ne, %20, %c0_i32_10 : i32
    scf.if %21 {
      %c0_11 = arith.constant 0 : index
      %c0_12 = arith.constant 0 : index
      %22 = vector.load %arg6[%c0_11, %c0_12] : memref<8x8xf32, #tpu.memory_space<vmem>>, vector<8x8xf32>
      %cst_13 = arith.constant dense<0xFF800000> : vector<8xf32>
      %23 = vector.multi_reduction <maximumf>, %22, %cst_13 [0] : vector<8x8xf32> to vector<8xf32>
      %24 = vector.shape_cast %23 : vector<8xf32> to vector<1x8xf32>
      %25 = vector.broadcast %24 : vector<1x8xf32> to vector<8x8xf32>
      %26 = arith.subf %22, %25 : vector<8x8xf32>
      %27 = math.exp %26 : vector<8x8xf32>
      %cst_14 = arith.constant dense<0.000000e+00> : vector<8xf32>
      %28 = vector.multi_reduction <add>, %27, %cst_14 [0] : vector<8x8xf32> to vector<8xf32>
      %29 = vector.shape_cast %28 : vector<8xf32> to vector<1x8xf32>
      %30 = tpu.reciprocal %29 {approx = true} : vector<1x8xf32> -> vector<1x8xf32>
      %31 = vector.broadcast %30 : vector<1x8xf32> to vector<8x8xf32>
      %32 = arith.mulf %27, %31 : vector<8x8xf32>
      %c0_15 = arith.constant 0 : index
      %c0_16 = arith.constant 0 : index
      %33 = vector.load %arg6[%c0_15, %c0_16] : memref<8x8xf32, #tpu.memory_space<vmem>>, vector<8x8xf32>
      tpu.vector_store %arg6[%c0_15, %c0_16], %32 {strides = array<i32>} : memref<8x8xf32, #tpu.memory_space<vmem>>, vector<8x8xf32>,
    } else {
    }
    return
  }
  func.func @transform_0(%arg0: i32, %arg1: i32) -> (i32, i32) {
    %c0_i32 = arith.constant 0 : i32
    %c0_i32_0 = arith.constant 0 : i32
    return %arg0, %c0_i32 : i32, i32
  }
  func.func @transform_1(%arg0: i32, %arg1: i32) -> (i32, i32, i32) {
    %c0_i32 = arith.constant 0 : i32
    %c0_i32_0 = arith.constant 0 : i32
    return %arg1, %arg0, %c0_i32 : i32, i32, i32
  }
  func.func @transform_2(%arg0: i32, %arg1: i32) -> (i32, i32) {
    %c0_i32 = arith.constant 0 : i32
    %c0_i32_0 = arith.constant 0 : i32
    %c0_i32_1 = arith.constant 0 : i32
    return %c0_i32, %c0_i32_0 : i32, i32
  }
  func.func @transform_3(%arg0: i32, %arg1: i32) -> (i32, i32) {
    %c0_i32 = arith.constant 0 : i32
    %c0_i32_0 = arith.constant 0 : i32
    %c0_i32_1 = arith.constant 0 : i32
    return %c0_i32, %c0_i32_0 : i32, i32
  }
  func.func @transform_4(%arg0: i32, %arg1: i32) -> (i32, i32) {
    %c0_i32 = arith.constant 0 : i32
    %c0_i32_0 = arith.constant 0 : i32
    return %c0_i32, %arg0 : i32, i32
  }
}

</mosaic_0001>

<bundles_post_ra>
// kernel: tpu_custom_call.1
= control target key start
LH: loop header
LB: loop body
LE: loop exit
PB: predicated region body
PF: predicated region fallthrough
CT: control target
= control target key end

     0   :  { %9 = vsyncpa [#allocation3], 0  ;;  %s489_s0 = inlined_call_operand.hbm [shape: f32[8,32], index: 0, kind: input, shape index: {}]   ;;  %s490_s1 = inlined_call_operand.hbm [shape: f32[8,8,32], index: 1, kind: input, shape index: {}]   ;;  %s491_s2 = inlined_call_operand.hbm [shape: f32[32,32], index: 2, kind: input, shape index: {}]   ;;  %s492_s3 = inlined_call_operand.vmem [shape: f32[1,32], index: 3, kind: input, shape index: {}]   ;;  %s493_s4 = inlined_call_operand.hbm [shape: f32[8,8], index: 4, kind: output, shape index: {}]  }
   0x1   :  { %10 = vsyncpa [#allocation6], 0  ;;  %s27_s17 = sshll.u32 %s490_s1, 4  ;;  %s28_s17 = int_to_ptr.hbm [resolvable:$true] %s27_s17 }
   0x2   :  { %11 = vsyncpa [#allocation4], 0  ;;  %s423_s18 = smov [#allocation5]   ;;  %s17_s22 = sshll.u32 %s489_s0, 4  ;;  %s18_s22 = int_to_ptr.hbm [resolvable:$true] %s17_s22 }
   0x3   :  { %s29_s19 = sshll.u32 %s423_s18, 4  ;;  %s424_s23 = smov 128   ;;  %s30_s19 = int_to_ptr.vmem [resolvable:$true] %s29_s19 }
   0x4   :  { %s425_s24 = smov 8   ;;  %s426_s25 = smov [#allocation2]  }
   0x5   :  { %35 = dma.hbm_to_vmem [thread:$0]  %s28_s17, 1024, %s30_s19, [#allocation6], %s424_s23, %s424_s23, %s425_s24  }
   0x6   :  { %s19_s26 = sshll.u32 %s426_s25, 4  ;;  %s40_s29 = sshll.u32 %s491_s2, 4  ;;  %s20_s26 = int_to_ptr.vmem [resolvable:$true] %s19_s26  ;;  %s41_s29 = int_to_ptr.hbm [resolvable:$true] %s40_s29 }
   0x7   :  { %22 = dma.hbm_to_vmem [thread:$0]  %s18_s22, 128, %s20_s26, [#allocation3]  }
   0x8   :  { %s427_s1 = smov [#allocation7]  }
   0x9   :  { %s42_s30 = sshll.u32 %s427_s1, 4  ;;  %s43_s30 = int_to_ptr.vmem [resolvable:$true] %s42_s30 }
   0xa   :  { %48 = dma.hbm_to_vmem [thread:$0]  %s41_s29, 512, %s43_s30, [#allocation6], %s424_s23, %s424_s23, %s425_s24  }
   0xb   :  { %417 = dma.done.wait [#allocation3], 128  }
   0xc   :  { %418 = vsyncadd [#allocation3], 4294967168 }
   0xd   :  { %419 = dma.done.wait [#allocation6], 1536  }
   0xe   :  { %420 = vsyncadd [#allocation6], 4294965760  ;;  %v74_v0 = vld [vmem:[#allocation7 + $0x18] sm:$0xff]  ;;  %v73_v1 = vld [vmem:[#allocation7 + $0x10] sm:$0xff]  ;;  %vm75_vm0 = vcmask 261120   ;;  %v203_v55 = vlaneseq  ;;  %vm213_vm1 = vcmask 1041409  }
   0xf   :  { %112 = vmatpush.msra.mxu0 %v74_v0  ;;  %283 = vmatpush.msra.mxu2 %v74_v0  ;;  %v72_v2 = vld [vmem:[#allocation7 + $0x8] sm:$0xff]  ;;  %v71_v3 = vld [vmem:[#allocation7] sm:$0xff]  ;;  %v65_v6 = vld [vmem:[#allocation5 + $0x10] sm:$0xff]  ;;  %vm215_vm2 = vcmask 1042434   ;;  %vm217_vm3 = vcmask 1043459   ;;  %vm219_vm4 = vcmask 1044484  }
  0x10   :  { %282 = vmatpush.msra.mxu1 %v74_v0  ;;  %284 = vmatpush.msra.mxu3 %v74_v0  ;;  %v63_v4 = vld [vmem:[#allocation5] sm:$0xff]  ;;  %v69_v7 = vld [vmem:[#allocation5 + $0x30] sm:$0xff]  ;;  %v64_v8 = vld [vmem:[#allocation5 + $0x8] sm:$0xff]  ;;  %v204_v57 = vand.u32 127, %v203_v55  ;;  %vm221_vm5 = vcmask 1045509   ;;  %vm223_vm6 = vcmask 1046534  }
  0x11   :  { %113 = vmatpush.msra.mxu0 %v73_v1  ;;  %286 = vmatpush.msra.mxu2 %v73_v1  ;;  %v67_v5 = vld [vmem:[#allocation5 + $0x20] sm:$0xff]  ;;  %v68_v9 = vld [vmem:[#allocation5 + $0x28] sm:$0xff]  ;;  %v66_v10 = vld [vmem:[#allocation5 + $0x18] sm:$0xff]  ;;  %vm225_vm7 = vcmask 1047559   ;;  %vm229_vm8 = vcmask 64512   ;;  %s263_s8 = sshll.u32 %s493_s4, 4  ;;  %s264_s8 = int_to_ptr.hbm [resolvable:$true] %s263_s8 }
  0x12   :  { %285 = vmatpush.msra.mxu1 %v73_v1  ;;  %287 = vmatpush.msra.mxu3 %v73_v1  ;;  %v70_v11 = vld [vmem:[#allocation5 + $0x38] sm:$0xff] }
  0x13   :  { %114 = vmatpush.msra.mxu0 %v72_v2  ;;  %289 = vmatpush.msra.mxu2 %v72_v2  ;;  %v141_v12 = vld [vmem:[#allocation2] sm:$0xff] }
  0x14   :  { %288 = vmatpush.msra.mxu1 %v72_v2  ;;  %290 = vmatpush.msra.mxu3 %v72_v2  ;;  %v300_v17 = vld [vmem:[%s492_s3] ss:$0 sm:$0xff]  ;;  %s428_s3 = smov [#allocation8]  }
  0x15   :  { %115 = vmatpush.msra.mxu0 %v71_v3  ;;  %292 = vmatpush.msra.mxu2 %v71_v3  ;;  %s261_s5 = sshll.u32 %s428_s3, 4  ;;  %s262_s5 = int_to_ptr.vmem [resolvable:$true] %s261_s5 }
  0x16   :  { %291 = vmatpush.msra.mxu1 %v71_v3  ;;  %274 = vmatmul.msk.f32.vlgmr.msra.gmra.mxu0 %vm75_vm0, %v63_v4 }
  0x17   :  { %278 = vmatmul.msk.f32.vlgmr.msra.gmra.mxu2 %vm75_vm0, %v67_v5  ;;  %276 = vmatmul.msk.f32.vlgmr.msra.gmra.mxu1 %vm75_vm0, %v65_v6 }
  0x18   :  { %293 = vmatpush.msra.mxu3 %v71_v3 }
  0x19   :  { %280 = vmatmul.msk.f32.vlgmr.msra.gmra.mxu3 %vm75_vm0, %v69_v7 }
  0x1e   :  { %275 = vmatmul.msk.f32.gmra.mxu0 %vm75_vm0, %v64_v8 }
  0x1f   :  { %279 = vmatmul.msk.f32.gmra.mxu2 %vm75_vm0, %v68_v9  ;;  %277 = vmatmul.msk.f32.gmra.mxu1 %vm75_vm0, %v66_v10 }
  0x21   :  { %281 = vmatmul.msk.f32.gmra.mxu3 %vm75_vm0, %v70_v11 }
  0x93   :  { %v117_v13 = vpop.f32.mrf.mxu0 }
  0x94   :  { %v142_v14 = vadd.f32 %v141_v12, %v117_v13  ;;  %v123_v15 = vpop.f32.mrf.mxu1 }
  0x95   :  { %v144_v16 = vadd.f32 %v141_v12, %v123_v15 }
  0x96   :  { %301 = vtanh.f32 %v142_v14 }
  0x97   :  { %303 = vtanh.f32 %v144_v16 }
  0x9a   :  { %v129_v18 = vpop.f32.mrf.mxu2 }
  0x9b   :  { %v146_v19 = vadd.f32 %v141_v12, %v129_v18  ;;  %v120_v20 = vpop.f32.mrf.mxu0 }
  0x9c   :  { %v302_v21 = vpop.eup %301  ;;  %v143_v22 = vadd.f32 %v141_v12, %v120_v20  ;;  %v126_v23 = vpop.f32.mrf.mxu1 }
  0x9d   :  { %v135_v24 = vpop.f32.mrf.mxu3  ;;  %v304_v25 = vpop.eup %303  ;;  %305 = vtanh.f32 %v146_v19  ;;  %v145_v26 = vadd.f32 %v141_v12, %v126_v23  ;;  %v162_v27 = vmul.f32 %v302_v21, %v300_v17 }
  0x9e   :  { %307 = vtanh.f32 %v143_v22  ;;  %v148_v28 = vadd.f32 %v141_v12, %v135_v24  ;;  %v164_v29 = vmul.f32 %v304_v25, %v300_v17 }
  0x9f   :  { %309 = vtanh.f32 %v145_v26  ;;  %v170_v30 = vsel %vm75_vm0, %v162_v27, 0.0 }
  0xa0   :  { %171 = vadd.xlane.f32.xlu0 %v170_v30  ;;  %v176_v31 = vsel %vm75_vm0, %v164_v29, 0.0  ;;  %311 = vtanh.f32 %v148_v28 }
  0xa1   :  { %177 = vadd.xlane.f32.xlu1 %v176_v31 }
  0xa2   :  { %v132_v32 = vpop.f32.mrf.mxu2 }
  0xa3   :  { %v306_v33 = vpop.eup %305  ;;  %v147_v34 = vadd.f32 %v141_v12, %v132_v32 }
  0xa4   :  { %v308_v35 = vpop.eup %307  ;;  %v166_v37 = vmul.f32 %v306_v33, %v300_v17 }
  0xa5   :  { %v138_v36 = vpop.f32.mrf.mxu3  ;;  %v310_v38 = vpop.eup %309  ;;  %313 = vtanh.f32 %v147_v34  ;;  %v163_v40 = vmul.f32 %v308_v35, %v300_v17 }
  0xa6   :  { %v149_v39 = vadd.f32 %v141_v12, %v138_v36  ;;  %v182_v41 = vsel %vm75_vm0, %v166_v37, 0.0  ;;  %v165_v42 = vmul.f32 %v310_v38, %v300_v17  ;;  %v312_v44 = vpop.eup %311 }
  0xa7   :  { %183 = vadd.xlane.f32.xlu2 %v182_v41  ;;  %v173_v43 = vsel %vm75_vm0, %v163_v40, 0.0  ;;  %v168_v47 = vmul.f32 %v312_v44, %v300_v17 }
  0xa8   :  { %315 = vtanh.f32 %v149_v39  ;;  %174 = vadd.xlane.f32.xlu0 %v173_v43  ;;  %v179_v45 = vsel %vm75_vm0, %v165_v42, 0.0 }
  0xa9   :  { %180 = vadd.xlane.f32.xlu1 %v179_v45  ;;  %v188_v52 = vsel %vm75_vm0, %v168_v47, 0.0 }
  0xab   :  { %v314_v46 = vpop.eup %313 }
  0xac   :  { %v167_v48 = vmul.f32 %v314_v46, %v300_v17 }
  0xae   :  { %v316_v49 = vpop.eup %315  ;;  %v185_v50 = vsel %vm75_vm0, %v167_v48, 0.0 }
  0xaf   :  { %v169_v51 = vmul.f32 %v316_v49, %v300_v17  ;;  %186 = vadd.xlane.f32.xlu2 %v185_v50 }
  0xb0   :  { %189 = vadd.xlane.f32.xlu0 %v188_v52 }
  0xb1   :  { %v191_v53 = vsel %vm75_vm0, %v169_v51, 0.0 }
  0xb2   :  { %192 = vadd.xlane.f32.xlu1 %v191_v53 }
 0x113   :  { %v172_v54 = vpop.xlane.xlu0 %171 }
 0x114   :  { %v178_v56 = vpop.xlane.xlu1 %177  ;;  %v205_v60 = vperm.slane %v172_v54, %v204_v57 }
 0x115   :  { %v207_v63 = vperm.slane %v178_v56, %v204_v57 }
 0x11a   :  { %v184_v58 = vpop.xlane.xlu2 %183 }
 0x11b   :  { %v175_v59 = vpop.xlane.xlu0 %174  ;;  %v209_v4 = vperm.slane %v184_v58, %v204_v57 }
 0x11c   :  { %v206_v61 = vperm.slane %v175_v59, %v204_v57  ;;  %v181_v62 = vpop.xlane.xlu1 %180 }
 0x11d   :  { %v208_v0 = vperm.slane %v181_v62, %v204_v57 }
 0x11e   :  { %v214_v1 = vsel %vm213_vm1, %v206_v61, %v205_v60 }
 0x11f   :  { %v216_v2 = vsel %vm215_vm2, %v207_v63, %v214_v1 }
 0x120   :  { %v218_v3 = vsel %vm217_vm3, %v208_v0, %v216_v2 }
 0x121   :  { %v220_v8 = vsel %vm219_vm4, %v209_v4, %v218_v3 }
 0x122   :  { %v187_v5 = vpop.xlane.xlu2 %186 }
 0x123   :  { %v210_v6 = vperm.slane %v187_v5, %v204_v57  ;;  %v190_v7 = vpop.xlane.xlu0 %189 }
 0x124   :  { %v211_v9 = vperm.slane %v190_v7, %v204_v57 }
 0x125   :  { %v193_v10 = vpop.xlane.xlu1 %192  ;;  %v222_v11 = vsel %vm221_vm5, %v210_v6, %v220_v8 }
 0x126   :  { %v212_v12 = vperm.slane %v193_v10, %v204_v57  ;;  %v224_v13 = vsel %vm223_vm6, %v211_v9, %v222_v11 }
 0x128   :  { %v226_v14 = vsel %vm225_vm7, %v212_v12, %v224_v13 }
 0x129   :  { %230 = vst.msk [vmem:[#allocation8] sm:$0xff] %vm229_vm8, %v226_v14 }
 0x130   :  { %v235_v15 = vld [vmem:[#allocation8] sm:$0xff] }
 0x131   :  { %v236_v16 = vsel %vm229_vm8, %v235_v15, -inf }
 0x132   :  { %v237_v17 = vrot.slane %v236_v16, 4 }
 0x134   :  { %v238_v18 = vmax.f32 %v236_v16, %v237_v17 }
 0x136   :  { %v239_v19 = vrot.slane %v238_v18, 2 }
 0x138   :  { %v240_v20 = vmax.f32 %v238_v18, %v239_v19 }
 0x13a   :  { %v241_v21 = vrot.slane %v240_v20, 1 }
 0x13c   :  { %v242_v22 = vmax.f32 %v240_v20, %v241_v21 }
 0x13e   :  { %v243_v23 = vsub.f32 %v235_v15, %v242_v22 }
 0x140   :  { %v244_v24 = vmul.f32 1.442695, %v243_v23 }
 0x142   :  { %317 = vpow2.f32 %v244_v24 }
 0x148   :  { %v318_v25 = vpop.eup %317 }
 0x149   :  { %v246_v26 = vsel %vm229_vm8, %v318_v25, 0.0 }
 0x14a   :  { %v247_v27 = vrot.slane %v246_v26, 4 }
 0x14c   :  { %v248_v28 = vadd.f32 %v247_v27, %v246_v26 }
 0x14e   :  { %v249_v29 = vrot.slane %v248_v28, 2 }
 0x150   :  { %v250_v30 = vadd.f32 %v249_v29, %v248_v28 }
 0x152   :  { %v251_v31 = vrot.slane %v250_v30, 1 }
 0x154   :  { %v252_v32 = vadd.f32 %v251_v31, %v250_v30 }
 0x156   :  { %319 = vrcp.f32 %v252_v32 }
 0x15c   :  { %v320_v33 = vpop.eup %319 }
 0x15d   :  { %v254_v34 = vmul.f32 %v320_v33, %v318_v25 }
 0x15f   :  { %255 = vst.msk [vmem:[#allocation8] sm:$0xff] %vm229_vm8, %v254_v34 }
 0x160   :  { %266 = dma.vmem_to_hbm [thread:$0]  %s262_s5, 128, %s264_s8, [#allocation4]  }
 0x161   :  { %421 = dma.done.wait [#allocation4], 128  }
 0x162   :  { %422 = vsyncadd [#allocation4], 4294967168 }
 0x163   :  { %271 = vsyncpa [#allocation3], 1 }
 0x164   :  { %272 = vsyncpa [#allocation6], 1 }
 0x165   :  { %273 = vsyncpa [#allocation4], 1 }

</bundles_post_ra>
